<compile_context>
chip_gen: v7x
topology: tpu7x:2x2x1
jax: 0.10.0
libtpu: 0.0.40
codegen_flags: <defaults>
</compile_context>

<pallas_src>
import functools

import jax
import jax.numpy as jnp
from jax.experimental import pallas as pl
from jax.experimental.pallas import tpu as pltpu


def _soft_hist_kernel(*refs, sigma_half, off, n, n_per, tile_n, chunk,
                      n_chunks, has_weights, need_mask):
    if has_weights:
        x_ref, w_ref, c_ref, o_ref, acc_ref = refs
    else:
        x_ref, c_ref, o_ref, acc_ref = refs
        w_ref = None

    p = pl.program_id(0)
    k = pl.program_id(1)

    @pl.when(k == 0)
    def _():
        acc_ref[...] = jnp.zeros_like(acc_ref)

    # Hoisted per-grid-step constants: (bins, 1) shifted/scaled centers so the
    # inner loop is one sub + two tanh (+ optional mul) per element.
    c = c_ref[...]                                   # (bins, 1)
    c_hi = sigma_half * c - off                      # arg = xs - c_hi  (upper edge)
    c_lo = sigma_half * c + off                      # arg = xs - c_lo  (lower edge)

    def body(j, carry):
        start = pl.multiple_of(j * chunk, chunk)
        xv = x_ref[:, pl.ds(start, chunk)]           # (1, chunk)
        xs = sigma_half * xv                         # (1, chunk)
        # (bins, chunk) broadcast lives entirely in vregs.
        s = 0.5 * (jnp.tanh(xs - c_hi) - jnp.tanh(xs - c_lo))
        if has_weights:
            # Padded samples carry weight 0 -> no mask needed.
            s = s * w_ref[:, pl.ds(start, chunk)]
        elif need_mask:
            lane = jax.lax.broadcasted_iota(jnp.int32, (1, chunk), 1)
            gidx = p * n_per + k * tile_n + start + lane
            s = jnp.where(gidx < n, s, 0.0)
        acc_ref[...] += s                            # pure VPU add, no reduce
        return carry

    jax.lax.fori_loop(0, n_chunks, body, None, unroll=True)

    @pl.when(k == pl.num_programs(1) - 1)
    def _():
        # Single cross-lane reduce + lane-1 store, once per parallel slice.
        o_ref[...] = jnp.sum(acc_ref[...], axis=1, keepdims=True)


def soft_histogram(x, weights=None, *, bins, vmin, vmax, sigma,
                   tile_n=8192, chunk=512, num_parallel=2):
    """Pallas implementation of SoftHistogram.forward."""
    assert chunk % 128 == 0 and tile_n % chunk == 0

    delta = float(vmax - vmin) / float(bins)
    centers = float(vmin) + delta * (jnp.arange(bins, dtype=jnp.float32) + 0.5)
    c2 = centers.reshape(bins, 1)

    x = jnp.atleast_1d(jnp.squeeze(x)).astype(jnp.float32)   # (N,)
    n = int(x.shape[0])
    P = int(num_parallel)

    # Per-parallel-slice sample count: pad to a multiple of chunk, shrink the
    # tile for small inputs, then pad to a multiple of the effective tile.
    n_per = pl.cdiv(max(pl.cdiv(n, P), 1), chunk) * chunk
    tile_eff = min(tile_n, n_per)
    n_per = pl.cdiv(n_per, tile_eff) * tile_eff
    n_pad = P * n_per
    kt = n_per // tile_eff
    n_chunks = tile_eff // chunk
    need_mask = (n_pad != n)

    x_p = jnp.pad(x, (0, n_pad - n)).reshape(P, 1, n_per)

    has_weights = weights is not None
    inputs = [x_p]
    in_specs = [pl.BlockSpec((None, 1, tile_eff), lambda p, k: (p, 0, k))]
    if has_weights:
        w = jnp.atleast_1d(jnp.squeeze(weights)).astype(jnp.float32)
        w_p = jnp.pad(w, (0, n_pad - n)).reshape(P, 1, n_per)
        inputs.append(w_p)
        in_specs.append(pl.BlockSpec((None, 1, tile_eff), lambda p, k: (p, 0, k)))
    inputs.append(c2)
    in_specs.append(pl.BlockSpec((bins, 1), lambda p, k: (0, 0)))  # resident

    kernel = functools.partial(
        _soft_hist_kernel,
        sigma_half=0.5 * float(sigma),
        off=0.25 * float(sigma) * delta,
        n=n,
        n_per=n_per,
        tile_n=tile_eff,
        chunk=chunk,
        n_chunks=n_chunks,
        has_weights=has_weights,
        need_mask=need_mask,
    )

    partial = pl.pallas_call(
        kernel,
        out_shape=jax.ShapeDtypeStruct((P, bins, 1), jnp.float32),
        grid_spec=pltpu.PrefetchScalarGridSpec(
            num_scalar_prefetch=0,
            grid=(P, kt),
            in_specs=in_specs,
            out_specs=pl.BlockSpec((None, bins, 1), lambda p, k: (p, 0, 0)),
            scratch_shapes=[pltpu.VMEM((bins, chunk), jnp.float32)],
        ),
        compiler_params=pltpu.CompilerParams(
            # Leading axis parallel (sharded across TCs on v7x);
            # trailing axis is the sequential N reduction.
            dimension_semantics=("parallel", "arbitrary"),
        ),
    )(*inputs)

    # Sum the per-core partial histograms.
    return partial[:, :, 0].sum(axis=0)  # (bins,)


def _reference(x, weights, *, bins, vmin, vmax, sigma):
    delta = float(vmax - vmin) / float(bins)
    centers = float(vmin) + delta * (jnp.arange(bins, dtype=jnp.float32) + 0.5)
    xs = jnp.squeeze(x)[None, :] - centers[:, None]
    s = jax.nn.sigmoid(sigma * (xs + delta / 2.0)) - jax.nn.sigmoid(
        sigma * (xs - delta / 2.0)
    )
    if weights is not None:
        return (s * jnp.squeeze(weights)).sum(axis=1)
    return s.sum(axis=1)


if __name__ == "__main__":
    key = jax.random.PRNGKey(0)
    kx, kw = jax.random.split(key)

    # SoftHistogram config (deterministic, in-script).
    BINS, VMIN, VMAX, SIGMA = 16, 0.0, 1.0, 100.0
    N = 1024

    x = jax.random.uniform(kx, (N, 1), dtype=jnp.float32)        # squeezed to (N,)
    weights = jax.random.uniform(kw, (N, 1), dtype=jnp.float32)  # squeezed to (N,)

    # Weighted histogram.
    out_w = soft_histogram(x, weights, bins=BINS, vmin=VMIN, vmax=VMAX, sigma=SIGMA)
    out_w = jax.block_until_ready(out_w)
    ref_w = _reference(x, weights, bins=BINS, vmin=VMIN, vmax=VMAX, sigma=SIGMA)
    assert out_w.shape == (BINS,)
    assert jnp.allclose(out_w, ref_w, rtol=1e-5, atol=1e-4)

    # Unweighted histogram (no ones-array DMA; padding masked in-kernel).
    out_u = soft_histogram(x, None, bins=BINS, vmin=VMIN, vmax=VMAX, sigma=SIGMA)
    out_u = jax.block_until_ready(out_u)
    ref_u = _reference(x, None, bins=BINS, vmin=VMIN, vmax=VMAX, sigma=SIGMA)
    assert jnp.allclose(out_u, ref_u, rtol=1e-5, atol=1e-4)

    # Odd size that exercises padding + in-kernel mask on the unweighted path.
    N2 = 777
    x2 = jax.random.uniform(kx, (N2, 1), dtype=jnp.float32)
    out_u2 = jax.block_until_ready(
        soft_histogram(x2, None, bins=BINS, vmin=VMIN, vmax=VMAX, sigma=SIGMA))
    ref_u2 = _reference(x2, None, bins=BINS, vmin=VMIN, vmax=VMAX, sigma=SIGMA)
    assert jnp.allclose(out_u2, ref_u2, rtol=1e-5, atol=1e-4)

    print("KERNEL_OK")
</pallas_src>

<mosaic_0001>
module attributes {stable_mosaic.version = 11 : i64} {
  func.func @_soft_hist_kernel(%arg0: i32, %arg1: i32, %arg2: memref<1x1x512xf32, #tpu.memory_space<vmem>>, %arg3: memref<1x1x512xf32, #tpu.memory_space<vmem>>, %arg4: memref<16x1xf32, #tpu.memory_space<vmem>>, %arg5: memref<1x16x1xf32, #tpu.memory_space<vmem>>, %arg6: memref<16x512xf32, #tpu.memory_space<vmem>>) attributes {dimension_semantics = [#tpu.dimension_semantics<parallel>, #tpu.dimension_semantics<arbitrary>], iteration_bounds = array<i64: 2, 1>, scalar_prefetch = 0 : i64, scratch_operands = 1 : i64, tpu.core_type = #tpu.core_type<tc>, window_params = [{transform_indices = @transform_0, window_bounds = array<i64: 1, 1, 512>}, {transform_indices = @transform_1, window_bounds = array<i64: 1, 1, 512>}, {pipeline_mode = #tpu.pipeline_mode<synchronous>, transform_indices = @transform_2, window_bounds = array<i64: 16, 1>}, {transform_indices = @transform_3, window_bounds = array<i64: 1, 16, 1>}]} {
    %c0_i32 = arith.constant 0 : i32
    %0 = arith.cmpi eq, %arg1, %c0_i32 : i32
    %1 = arith.extui %0 : i1 to i32
    %c0_i32_0 = arith.constant 0 : i32
    %2 = arith.cmpi ne, %1, %c0_i32_0 : i32
    scf.if %2 {
      %cst_18 = arith.constant 0.000000e+00 : f32
      %41 = vector.broadcast %cst_18 : f32 to vector<16x512xf32>
      %c0_19 = arith.constant 0 : index
      %c0_20 = arith.constant 0 : index
      %42 = vector.load %arg6[%c0_19, %c0_20] : memref<16x512xf32, #tpu.memory_space<vmem>>, vector<16x512xf32>
      tpu.vector_store %arg6[%c0_19, %c0_20], %41 {strides = array<i32>} : memref<16x512xf32, #tpu.memory_space<vmem>>, vector<16x512xf32>,
    } else {
    }
    %c0 = arith.constant 0 : index
    %c0_1 = arith.constant 0 : index
    %3 = vector.load %arg4[%c0, %c0_1] : memref<16x1xf32, #tpu.memory_space<vmem>>, vector<16x1xf32>
    %cst = arith.constant 5.000000e+01 : f32
    %4 = vector.broadcast %cst : f32 to vector<16x1xf32>
    %5 = arith.mulf %4, %3 : vector<16x1xf32>
    %cst_2 = arith.constant 1.562500e+00 : f32
    %6 = vector.broadcast %cst_2 : f32 to vector<16x1xf32>
    %7 = arith.subf %5, %6 : vector<16x1xf32>
    %cst_3 = arith.constant 5.000000e+01 : f32
    %8 = vector.broadcast %cst_3 : f32 to vector<16x1xf32>
    %9 = arith.mulf %8, %3 : vector<16x1xf32>
    %cst_4 = arith.constant 1.562500e+00 : f32
    %10 = vector.broadcast %cst_4 : f32 to vector<16x1xf32>
    %11 = arith.addf %9, %10 : vector<16x1xf32>
    %c0_i32_5 = arith.constant 0 : i32
    %c512_i32 = arith.constant 512 : i32
    %12 = arith.muli %c0_i32_5, %c512_i32 : i32
    %13 = tpu.assume_multiple %12, 512 : i32
    %c0_6 = arith.constant 0 : index
    %c0_7 = arith.constant 0 : index
    %14 = arith.index_cast %13 : i32 to index
    %15 = vector.load %arg2[%c0_6, %c0_7, %14] : memref<1x1x512xf32, #tpu.memory_space<vmem>>, vector<1x1x512xf32>
    %16 = vector.shape_cast %15 : vector<1x1x512xf32> to vector<1x512xf32>
    %cst_8 = arith.constant 5.000000e+01 : f32
    %17 = vector.broadcast %cst_8 : f32 to vector<1x512xf32>
    %18 = arith.mulf %17, %16 : vector<1x512xf32>
    %19 = vector.broadcast %18 : vector<1x512xf32> to vector<16x512xf32>
    %20 = vector.broadcast %7 : vector<16x1xf32> to vector<16x512xf32>
    %21 = arith.subf %19, %20 : vector<16x512xf32>
    %22 = math.tanh %21 : vector<16x512xf32>
    %23 = vector.broadcast %18 : vector<1x512xf32> to vector<16x512xf32>
    %24 = vector.broadcast %11 : vector<16x1xf32> to vector<16x512xf32>
    %25 = arith.subf %23, %24 : vector<16x512xf32>
    %26 = math.tanh %25 : vector<16x512xf32>
    %27 = arith.subf %22, %26 : vector<16x512xf32>
    %cst_9 = arith.constant 5.000000e-01 : f32
    %28 = vector.broadcast %cst_9 : f32 to vector<16x512xf32>
    %29 = arith.mulf %28, %27 : vector<16x512xf32>
    %c0_10 = arith.constant 0 : index
    %c0_11 = arith.constant 0 : index
    %30 = arith.index_cast %13 : i32 to index
    %31 = vector.load %arg3[%c0_10, %c0_11, %30] : memref<1x1x512xf32, #tpu.memory_space<vmem>>, vector<1x1x512xf32>
    %32 = vector.shape_cast %31 : vector<1x1x512xf32> to vector<1x512xf32>
    %33 = vector.broadcast %32 : vector<1x512xf32> to vector<16x512xf32>
    %34 = arith.mulf %29, %33 : vector<16x512xf32>
    %c0_12 = arith.constant 0 : index
    %c0_13 = arith.constant 0 : index
    %35 = vector.load %arg6[%c0_12, %c0_13] : memref<16x512xf32, #tpu.memory_space<vmem>>, vector<16x512xf32>
    %36 = arith.addf %35, %34 : vector<16x512xf32>
    %c0_14 = arith.constant 0 : index
    %c0_15 = arith.constant 0 : index
    %37 = vector.load %arg6[%c0_14, %c0_15] : memref<16x512xf32, #tpu.memory_space<vmem>>, vector<16x512xf32>
    tpu.vector_store %arg6[%c0_14, %c0_15], %36 {strides = array<i32>} : memref<16x512xf32, #tpu.memory_space<vmem>>, vector<16x512xf32>,
    %c1_i32 = arith.constant 1 : i32
    %c0_i32_16 = arith.constant 0 : i32
    %38 = arith.cmpi eq, %arg1, %c0_i32_16 : i32
    %39 = arith.extui %38 : i1 to i32
    %c0_i32_17 = arith.constant 0 : i32
    %40 = arith.cmpi ne, %39, %c0_i32_17 : i32
    scf.if %40 {
      %c0_18 = arith.constant 0 : index
      %c0_19 = arith.constant 0 : index
      %41 = vector.load %arg6[%c0_18, %c0_19] : memref<16x512xf32, #tpu.memory_space<vmem>>, vector<16x512xf32>
      %cst_20 = arith.constant dense<0.000000e+00> : vector<16xf32>
      %42 = vector.multi_reduction <add>, %41, %cst_20 [1] : vector<16x512xf32> to vector<16xf32>
      %43 = vector.shape_cast %42 : vector<16xf32> to vector<16x1xf32>
      %c0_21 = arith.constant 0 : index
      %c0_22 = arith.constant 0 : index
      %c0_23 = arith.constant 0 : index
      %44 = vector.load %arg5[%c0_21, %c0_22, %c0_23] : memref<1x16x1xf32, #tpu.memory_space<vmem>>, vector<1x16x1xf32>
      %45 = vector.shape_cast %44 : vector<1x16x1xf32> to vector<16x1xf32>
      %46 = vector.shape_cast %43 : vector<16x1xf32> to vector<1x16x1xf32>
      tpu.vector_store %arg5[%c0_21, %c0_22, %c0_23], %46 {strides = array<i32>} : memref<1x16x1xf32, #tpu.memory_space<vmem>>, vector<1x16x1xf32>,
    } else {
    }
    return
  }
  func.func @transform_0(%arg0: i32, %arg1: i32) -> (i32, i32, i32) {
    %c0_i32 = arith.constant 0 : i32
    %c0_i32_0 = arith.constant 0 : i32
    return %arg0, %c0_i32, %arg1 : i32, i32, i32
  }
  func.func @transform_1(%arg0: i32, %arg1: i32) -> (i32, i32, i32) {
    %c0_i32 = arith.constant 0 : i32
    %c0_i32_0 = arith.constant 0 : i32
    return %arg0, %c0_i32, %arg1 : i32, i32, i32
  }
  func.func @transform_2(%arg0: i32, %arg1: i32) -> (i32, i32) {
    %c0_i32 = arith.constant 0 : i32
    %c0_i32_0 = arith.constant 0 : i32
    %c0_i32_1 = arith.constant 0 : i32
    return %c0_i32, %c0_i32_0 : i32, i32
  }
  func.func @transform_3(%arg0: i32, %arg1: i32) -> (i32, i32, i32) {
    %c0_i32 = arith.constant 0 : i32
    %c0_i32_0 = arith.constant 0 : i32
    %c0_i32_1 = arith.constant 0 : i32
    return %arg0, %c0_i32, %c0_i32_0 : i32, i32, i32
  }
}

</mosaic_0001>

<bundles_post_ra>
// kernel: tpu_custom_call.1
= control target key start
LH: loop header
LB: loop body
LE: loop exit
PB: predicated region body
PF: predicated region fallthrough
CT: control target
= control target key end

     0   :  { %s617_s12 = smov 0   ;;  %s619_s13 = smov 0   ;;  %s677_s0 = inlined_call_operand.vmem [shape: f32[2,1,512], index: 0, kind: input, shape index: {}]   ;;  %s678_s1 = inlined_call_operand.vmem [shape: f32[2,1,512], index: 1, kind: input, shape index: {}]   ;;  %s679_s2 = inlined_call_operand.vmem [shape: f32[16,1], index: 2, kind: input, shape index: {}]   ;;  %s680_s3 = inlined_call_operand.vmem [shape: f32[2,16,1], index: 3, kind: output, shape index: {}]  }
   0x1   :  { %s621_s14 = smov 0  }
   0x2 LB: > { %s25_s15 = sadd.s32 1, %s590_s13  ;;  %p503_p0 = scmp.ge.s32.totalorder %s594_s14, 1  ;;  %s594_s14 = sphi %s621_s14, %s13_s14   ;;  %s590_s13 = sphi %s619_s13, %s682_s13   ;;  %s586_s12 = sphi %s617_s12, %s681_s12  }
   0x3   : > { %p27_p1 = scmp.ge.s32.totalorder %s25_s15, 2  ;;  %p171_p2 = scmp.lt.s32.totalorder %s594_s14, 3 }
   0x5   : > { %s684_s15 = smov (%p27_p1, %s25_s15), 0  ;;  %p172_p3 = pnand %p503_p0, %p171_p2 }
   0x6   : > { %v241_v0 = vld [vmem:[%s679_s2] sm:$0xff] (!%p172_p3)  ;;  %v242_v1 = vld [vmem:[%s679_s2 + $0x8] sm:$0xff] (!%p172_p3)  ;;  %v596_v2 = vmov (!%p172_p3), 0   ;;  %p207_p4 = scmp.lt.s32.totalorder (!%p172_p3), %s586_s12, 1  ;;  %v252_v9 = vlaneseq (!%p172_p3)  ;;  %vm415_vm0 = vcmask (!%p172_p3), 7168  }
   0x7   : > { %175 = sbr.rel (%p172_p3) target bundleno = 320 (0x140), region = 32  ;;  %539 = vset.pattern.permute.xlu1 (!%p172_p3), %v596_v2  ;;  %538 = vset.pattern.permute.xlu0 (!%p172_p3), %v596_v2  ;;  %v243_v3 = vmul.f32 (!%p172_p3), 50.0, %v241_v0  ;;  %v244_v4 = vmul.f32 (!%p172_p3), 50.0, %v242_v1 }
   0x8   : > { %v649_v10 = vshrl.u32 (!%p172_p3), %v252_v9, 7 }
   0x9   : > { %v247_v5 = vadd.f32 (!%p172_p3), 1.5625, %v243_v3  ;;  %v508_v6 = vadd.f32 (!%p172_p3), -1.5625, %v243_v3  ;;  %v248_v7 = vadd.f32 (!%p172_p3), 1.5625, %v244_v4  ;;  %v509_v8 = vadd.f32 (!%p172_p3), -1.5625, %v244_v4 }
   0xa   : > { %v254_v12 = vsub.s32 (!%p172_p3), 0, %v649_v10  ;;  %v258_v13 = vsub.s32 (!%p172_p3), 1, %v649_v10  ;;  %v262_v14 = vsub.s32 (!%p172_p3), 2, %v649_v10  ;;  %v266_v16 = vsub.s32 (!%p172_p3), 3, %v649_v10 }
   0xb   : > { %300 = vperm.xlu1 (!%p172_p3), %539, %v247_v5   ;;  %274 = vperm.xlu0 (!%p172_p3), %538, %v508_v6  }
   0xe   : > { %s686_s12 = smov (!%p207_p4, %s586_s12), 1 }
   0xf   : > { %305 = vperm.xlu1 %539, %v248_v7   ;;  %279 = vperm.xlu0 %538, %v509_v8   ;;  %s504_s20 = sshll.u32 %s686_s12, 2  ;;  %s512_s27 = sshll.u32 %s686_s12, 4 }
  0x10   : > { %s213_s23 = scalar_lea.vmem %s677_s0, %s504_s20  ;;  %s222_s26 = scalar_lea.vmem %s678_s1, %s504_s20 }
  0x11   : > { %v249_v11 = vld [vmem:[%s213_s23] sm:$0xf]  ;;  %s228_s30 = scalar_lea.vmem %s680_s3, %s512_s27 }
  0x12   : > { %v250_v15 = vmul.f32 50.0, %v249_v11  ;;  %v340_v44 = vld [vmem:[%s222_s26] sm:$0xf] }
  0x13   : > { %v345_v49 = vrot.slane %v340_v44, %v254_v12  ;;  %v349_v52 = vrot.slane %v340_v44, %v258_v13  ;;  %v353_v59 = vrot.slane %v340_v44, %v262_v14  ;;  %v357_v1 = vrot.slane %v340_v44, %v266_v16 }
  0x14   : > { %v255_v17 = vrot.slane %v250_v15, %v254_v12  ;;  %v259_v18 = vrot.slane %v250_v15, %v258_v13  ;;  %v263_v19 = vrot.slane %v250_v15, %v262_v14  ;;  %v267_v20 = vrot.slane %v250_v15, %v266_v16 }
  0x8a   : > { %v301_v21 = vpop.permute.xlu1 %300  ;;  %v275_v22 = vpop.permute.xlu0 %274 }
  0x8b   : > { %v308_v23 = vsub.f32 %v255_v17, %v301_v21  ;;  %v309_v24 = vsub.f32 %v259_v18, %v301_v21  ;;  %v310_v25 = vsub.f32 %v263_v19, %v301_v21  ;;  %v311_v26 = vsub.f32 %v267_v20, %v301_v21 }
  0x8c   : > { %v282_v27 = vsub.f32 %v255_v17, %v275_v22  ;;  %v283_v28 = vsub.f32 %v259_v18, %v275_v22  ;;  %v284_v30 = vsub.f32 %v263_v19, %v275_v22  ;;  %v285_v31 = vsub.f32 %v267_v20, %v275_v22 }
  0x8d   : > { %540 = vtanh.f32 %v308_v23 }
  0x8e   : > { %542 = vtanh.f32 %v309_v24  ;;  %v306_v29 = vpop.permute.xlu1 %305  ;;  %v280_v34 = vpop.permute.xlu0 %279 }
  0x8f   : > { %544 = vtanh.f32 %v310_v25  ;;  %v312_v32 = vsub.f32 %v255_v17, %v306_v29  ;;  %v313_v33 = vsub.f32 %v259_v18, %v306_v29  ;;  %v314_v35 = vsub.f32 %v263_v19, %v306_v29 }
  0x90   : > { %546 = vtanh.f32 %v311_v26  ;;  %v315_v36 = vsub.f32 %v267_v20, %v306_v29  ;;  %v286_v37 = vsub.f32 %v255_v17, %v280_v34  ;;  %v287_v38 = vsub.f32 %v259_v18, %v280_v34 }
  0x91   : > { %548 = vtanh.f32 %v282_v27  ;;  %v288_v40 = vsub.f32 %v263_v19, %v280_v34  ;;  %v289_v42 = vsub.f32 %v267_v20, %v280_v34 }
  0x92   : > { %550 = vtanh.f32 %v283_v28 }
  0x93   : > { %552 = vtanh.f32 %v284_v30 }
  0x94   : > { %554 = vtanh.f32 %v285_v31 }
  0x95   : > { %556 = vtanh.f32 %v312_v32 }
  0x96   : > { %558 = vtanh.f32 %v313_v33 }
  0x97   : > { %v541_v39 = vpop.eup %540  ;;  %560 = vtanh.f32 %v314_v35 }
  0x98   : > { %v543_v41 = vpop.eup %542  ;;  %562 = vtanh.f32 %v315_v36 }
  0x99   : > { %v545_v43 = vpop.eup %544  ;;  %564 = vtanh.f32 %v286_v37 }
  0x9a   : > { %v547_v45 = vpop.eup %546  ;;  %566 = vtanh.f32 %v287_v38 }
  0x9b   : > { %v549_v46 = vpop.eup %548  ;;  %568 = vtanh.f32 %v288_v40 }
  0x9c   : > { %v551_v47 = vpop.eup %550  ;;  %570 = vtanh.f32 %v289_v42  ;;  %v324_v48 = vsub.f32 %v549_v46, %v541_v39 }
  0x9d   : > { %v553_v50 = vpop.eup %552  ;;  %v325_v51 = vsub.f32 %v551_v47, %v543_v41 }
  0x9e   : > { %v555_v53 = vpop.eup %554  ;;  %v326_v54 = vsub.f32 %v553_v50, %v545_v43  ;;  %v332_v55 = vmul.f32 0.5, %v324_v48 }
  0x9f   : > { %v557_v56 = vpop.eup %556  ;;  %v327_v57 = vsub.f32 %v555_v53, %v547_v45  ;;  %v333_v58 = vmul.f32 0.5, %v325_v51 }
  0xa0   : > { %v559_v60 = vpop.eup %558  ;;  %v334_v61 = vmul.f32 0.5, %v326_v54  ;;  %v362_v62 = vmul.f32 %v345_v49, %v332_v55 }
  0xa1   : > { %v561_v63 = vpop.eup %560  ;;  %v335_v0 = vmul.f32 0.5, %v327_v57  ;;  %v363_v2 = vmul.f32 %v349_v52, %v333_v58 }
  0xa2   : > { %v563_v3 = vpop.eup %562  ;;  %v364_v5 = vmul.f32 %v353_v59, %v334_v61 }
  0xa3   : > { %v565_v4 = vpop.eup %564  ;;  %v405_v6 = vadd.f32 %v363_v2, %v362_v62  ;;  %v365_v11 = vmul.f32 %v357_v1, %v335_v0 }
  0xa4   : > { %v567_v7 = vpop.eup %566  ;;  %v328_v8 = vsub.f32 %v565_v4, %v557_v56 }
  0xa5   : > { %v569_v9 = vpop.eup %568  ;;  %v406_v12 = vadd.f32 %v405_v6, %v364_v5  ;;  %v329_v13 = vsub.f32 %v567_v7, %v559_v60 }
  0xa6   : > { %v571_v14 = vpop.eup %570  ;;  %v330_v15 = vsub.f32 %v569_v9, %v561_v63  ;;  %v336_v17 = vmul.f32 0.5, %v328_v8 }
  0xa7   : > { %v407_v18 = vadd.f32 %v406_v12, %v365_v11  ;;  %v331_v19 = vsub.f32 %v571_v14, %v563_v3  ;;  %v337_v20 = vmul.f32 0.5, %v329_v13 }
  0xa8   : > { %v338_v10 = vmul.f32 0.5, %v330_v15  ;;  %v366_v16 = vmul.f32 %v345_v49, %v336_v17 }
  0xa9   : > { %408 = vadd.xlane.f32.xlu0 %v407_v18  ;;  %v339_v21 = vmul.f32 0.5, %v331_v19  ;;  %v367_v22 = vmul.f32 %v349_v52, %v337_v20 }
  0xaa   : > { %v368_v23 = vmul.f32 %v353_v59, %v338_v10 }
  0xab   : > { %v410_v24 = vadd.f32 %v367_v22, %v366_v16  ;;  %v369_v25 = vmul.f32 %v357_v1, %v339_v21 }
  0xad   : > { %v411_v26 = vadd.f32 %v410_v24, %v368_v23 }
  0xaf   : > { %v412_v27 = vadd.f32 %v411_v26, %v369_v25 }
  0xb1   : > { %413 = vadd.xlane.f32.xlu1 %v412_v27 }
 0x136   : > { %v409_v28 = vpop.xlane.xlu0 %408 }
 0x137   : > { %416 = vst.msk [vmem:[%s228_s30] sm:$0xff] %vm415_vm0, %v409_v28 }
 0x13e   : > { %v414_v29 = vpop.xlane.xlu1 %413 }
 0x13f   : > { %417 = vst.msk [vmem:[%s228_s30 + $0x8] sm:$0xff] %vm415_vm0, %v414_v29 }
 0x140 PF: > { %s13_s14 = sadd.s32 1, %s594_s14   ;;  %s681_s12 = smov %s590_s13 }
 0x141   : > { %p10_p5 = scmp.ge.s32.totalorder %s13_s14, 4   ;;  %s682_s13 = smov %s684_s15 }
 0x143   :  { %12 = sbr.rel (!%p10_p5) target bundleno = 2 (0x2), region = 73 }

</bundles_post_ra>
